<compile_context>
chip_gen: v5e
topology: v5e:2x2
jax: 0.10.0
libtpu: 0.0.40
codegen_flags: <defaults>
</compile_context>

<pallas_src>
import functools
import math

import jax
import jax.numpy as jnp
from jax.experimental import pallas as pl
from jax.experimental.pallas import tpu as pltpu


def _round_up(x, m):
    return ((x + m - 1) // m) * m


def _largest_aligned_divisor(n, pref, align):
    """Largest multiple of `align` that divides n and is <= pref.
    Assumes n is itself a multiple of `align`."""
    d = min(pref, n)
    d -= d % align
    while d >= align:
        if n % d == 0:
            return d
        d -= align
    return align


def _choose_layout(n, *, tm_pref=256, tn_pref=512):
    """Pick (n_pad, tm, tn) so the output tile is always a legal TPU block:
    tm multiple of 8 (or == n_pad), tn multiple of 128 (or == n_pad), both
    dividing n_pad exactly."""
    if n <= tn_pref:
        # Small / moderate N: full-dim tiles (legal regardless of alignment).
        n_pad, tm, tn = n, n, n
    else:
        # Large N: pad nodes to a multiple of 128, lane-dense tiles.
        n_pad = _round_up(n, 128)
        tn = _largest_aligned_divisor(n_pad, tn_pref, 128)
        tm = _largest_aligned_divisor(n_pad, tm_pref, 8)

    # Guarantee >= 2 tiles along a parallel grid axis so both TensorCores of
    # a v7x chip get work (neutral-to-minor cost on single-TC chips).
    if (n_pad // tm) * (n_pad // tn) == 1:
        if tm % 16 == 0:
            tm //= 2
        elif tn % 256 == 0:
            tn //= 2
    return n_pad, tm, tn


def _choose_time_block(win_size, tm, tn, itemsize,
                       *, target_bytes=2 << 20, max_tw=8):
    """Number of time steps written per grid step: aim for ~2 MiB per output
    slab so the per-step pipeline overhead is well amortized, capped at 8 to
    bound the output double-buffer VMEM."""
    tile_bytes = max(1, tm * tn * itemsize)
    tw = -(-target_bytes // tile_bytes)          # ceil div
    return int(max(1, min(max_tw, tw, win_size)))


def _tmf_enc_kernel(u_ref, wt_ref, out_ref, a0_ref, a1_ref, a2_ref, *, tw):
    """One grid step = (row-tile i, col-tile j, time-block tb), tb innermost.

    tb == 0 : A_k = U_tile @ W_k^T_tile once (MXU) into VMEM scratch.
    every tb: for the tw time steps of this block, write
              A0 + (t+1)*A1 + (t+1)^2*A2 (pure VPU) to the output slab.
    """
    tb = pl.program_id(2)

    @pl.when(tb == 0)
    def _():
        u = u_ref[...]
        # wt_ref holds [W0^T, W1^T, W2^T] tiles: plain (tm,H)x(H,tn) dots,
        # no in-kernel transpose.
        a0_ref[...] = jnp.dot(u, wt_ref[0], preferred_element_type=jnp.float32)
        a1_ref[...] = jnp.dot(u, wt_ref[1], preferred_element_type=jnp.float32)
        a2_ref[...] = jnp.dot(u, wt_ref[2], preferred_element_type=jnp.float32)

    a0 = a0_ref[...]
    a1 = a1_ref[...]
    a2 = a2_ref[...]
    t_base = tb * tw
    for s in range(tw):                       # static unroll over time block
        tp1 = (t_base + (s + 1)).astype(jnp.float32)
        out_ref[s] = (a0 + tp1 * a1 + (tp1 * tp1) * a2).astype(out_ref.dtype)


def tmf_enc_forward(w0, w1, w2, u, win_size, *, out_dtype=jnp.float32,
                    tm_pref=256, tn_pref=512):
    """Returns a (win_size, N, N) stack of reconstructed adjacency matrices,
    equivalent to the list returned by TMF_Enc.forward().  (The module also
    returns its parameters unchanged; that passthrough is not a kernel.)"""
    num_nodes, hid_dim = w0.shape

    n_pad, tm, tn = _choose_layout(num_nodes, tm_pref=tm_pref, tn_pref=tn_pref)
    itemsize = jnp.dtype(out_dtype).itemsize
    tw = _choose_time_block(win_size, tm, tn, itemsize)
    win_pad = _round_up(win_size, tw)

    u_p = u.astype(jnp.float32)
    w_stack = jnp.stack([w0, w1, w2], axis=0).astype(jnp.float32)   # (3, N, H)
    if n_pad != num_nodes:
        pad = n_pad - num_nodes
        u_p = jnp.pad(u_p, ((0, pad), (0, 0)))
        w_stack = jnp.pad(w_stack, ((0, 0), (0, pad), (0, 0)))
    # Pre-transpose the weights once on the host side: (3, H, N_pad).
    wt = jnp.transpose(w_stack, (0, 2, 1))

    grid = (n_pad // tm, n_pad // tn, win_pad // tw)

    u_spec = pl.BlockSpec((tm, hid_dim), lambda i, j, tb: (i, 0))
    w_spec = pl.BlockSpec((3, hid_dim, tn), lambda i, j, tb: (0, 0, j))
    out_spec = pl.BlockSpec((tw, tm, tn), lambda i, j, tb: (tb, i, j))

    out = pl.pallas_call(
        functools.partial(_tmf_enc_kernel, tw=tw),
        out_shape=jax.ShapeDtypeStruct((win_pad, n_pad, n_pad), out_dtype),
        grid_spec=pltpu.PrefetchScalarGridSpec(
            num_scalar_prefetch=0,
            grid=grid,
            in_specs=[u_spec, w_spec],
            out_specs=out_spec,
            scratch_shapes=[pltpu.VMEM((tm, tn), jnp.float32),   # A0
                            pltpu.VMEM((tm, tn), jnp.float32),   # A1
                            pltpu.VMEM((tm, tn), jnp.float32)],  # A2
        ),
        compiler_params=pltpu.CompilerParams(
            dimension_semantics=("parallel", "parallel", "arbitrary")),
    )(u_p, wt)

    if win_pad != win_size or n_pad != num_nodes:
        out = out[:win_size, :num_nodes, :num_nodes]
    return out


def xavier_uniform(key, shape, dtype=jnp.float32):
    """Matches torch.nn.init.xavier_uniform_ for a 2-D (num_nodes, hid_dim)
    tensor: bound = sqrt(6 / (fan_in + fan_out))."""
    fan_out, fan_in = shape
    bound = math.sqrt(6.0 / (fan_in + fan_out))
    return jax.random.uniform(key, shape, dtype=dtype, minval=-bound, maxval=bound)


# TODO(synk): get_loss / Adam optimization (model_opt) are host-side training
# logic, not part of the forward kernel; only forward() is implemented here.

if __name__ == "__main__":
    def reference(w0, w1, w2, u, win_size):
        outs = []
        for t in range(win_size):
            v = w0 + w1 * (t + 1) + w2 * (t + 1) * (t + 1)
            outs.append(u @ v.T)
        return jnp.stack(outs, axis=0)

    # Case 1: module-consistent tiny shapes (full-dim tile path).
    num_nodes, hid_dim, win_size = 16, 32, 4
    k0, k1, k2, k3 = jax.random.split(jax.random.PRNGKey(0), 4)
    W_0 = xavier_uniform(k0, (num_nodes, hid_dim))
    W_1 = xavier_uniform(k1, (num_nodes, hid_dim))
    W_2 = xavier_uniform(k2, (num_nodes, hid_dim))
    U = xavier_uniform(k3, (num_nodes, hid_dim))

    out = jax.block_until_ready(tmf_enc_forward(W_0, W_1, W_2, U, win_size))
    ref = reference(W_0, W_1, W_2, U, win_size)
    assert out.shape == (win_size, num_nodes, num_nodes)
    assert jnp.allclose(out, ref, atol=1e-3, rtol=1e-3), \
        float(jnp.max(jnp.abs(out - ref)))

    # Case 2: exercises time-blocking + split parallel tiles (N=256, win=6).
    num_nodes, hid_dim, win_size = 256, 32, 6
    k0, k1, k2, k3 = jax.random.split(jax.random.PRNGKey(1), 4)
    W_0 = xavier_uniform(k0, (num_nodes, hid_dim))
    W_1 = xavier_uniform(k1, (num_nodes, hid_dim))
    W_2 = xavier_uniform(k2, (num_nodes, hid_dim))
    U = xavier_uniform(k3, (num_nodes, hid_dim))

    out = jax.block_until_ready(tmf_enc_forward(W_0, W_1, W_2, U, win_size))
    ref = reference(W_0, W_1, W_2, U, win_size)
    assert out.shape == (win_size, num_nodes, num_nodes)
    assert jnp.allclose(out, ref, atol=1e-3, rtol=1e-3), \
        float(jnp.max(jnp.abs(out - ref)))

    print("KERNEL_OK")
</pallas_src>

<mosaic_0001>
module attributes {stable_mosaic.version = 11 : i64} {
  func.func @_tmf_enc_kernel(%arg0: i32, %arg1: i32, %arg2: i32, %arg3: memref<8x32xf32, #tpu.memory_space<vmem>>, %arg4: memref<3x32x16xf32, #tpu.memory_space<vmem>>, %arg5: memref<4x8x16xf32, #tpu.memory_space<vmem>>, %arg6: memref<8x16xf32, #tpu.memory_space<vmem>>, %arg7: memref<8x16xf32, #tpu.memory_space<vmem>>, %arg8: memref<8x16xf32, #tpu.memory_space<vmem>>) attributes {dimension_semantics = [#tpu.dimension_semantics<parallel>, #tpu.dimension_semantics<parallel>, #tpu.dimension_semantics<arbitrary>], iteration_bounds = array<i64: 2, 1, 1>, scalar_prefetch = 0 : i64, scratch_operands = 3 : i64, tpu.core_type = #tpu.core_type<tc>, window_params = [{transform_indices = @transform_0, window_bounds = array<i64: 8, 32>}, {transform_indices = @transform_1, window_bounds = array<i64: 3, 32, 16>}, {transform_indices = @transform_2, window_bounds = array<i64: 4, 8, 16>}]} {
    %c0_i32 = arith.constant 0 : i32
    %0 = arith.cmpi eq, %arg2, %c0_i32 : i32
    %1 = arith.extui %0 : i1 to i32
    %c0_i32_0 = arith.constant 0 : i32
    %2 = arith.cmpi ne, %1, %c0_i32_0 : i32
    scf.if %2 {
      %c0_16 = arith.constant 0 : index
      %c0_17 = arith.constant 0 : index
      %55 = vector.load %arg3[%c0_16, %c0_17] : memref<8x32xf32, #tpu.memory_space<vmem>>, vector<8x32xf32>
      %c0_18 = arith.constant 0 : index
      %c0_19 = arith.constant 0 : index
      %c0_20 = arith.constant 0 : index
      %56 = vector.load %arg4[%c0_18, %c0_19, %c0_20] : memref<3x32x16xf32, #tpu.memory_space<vmem>>, vector<1x32x16xf32>
      %57 = vector.shape_cast %56 : vector<1x32x16xf32> to vector<32x16xf32>
      %cst = arith.constant dense<0.000000e+00> : vector<8x16xf32>
      %58 = tpu.matmul %55, %57, %cst {dimension_numbers = #tpu.dot_dimension_numbers<[1], [0], [0], [1], [0, 0, 1, 1], [], []>} : vector<8x32xf32>, vector<32x16xf32>, vector<8x16xf32> -> vector<8x16xf32>
      %c0_21 = arith.constant 0 : index
      %c0_22 = arith.constant 0 : index
      %59 = vector.load %arg6[%c0_21, %c0_22] : memref<8x16xf32, #tpu.memory_space<vmem>>, vector<8x16xf32>
      tpu.vector_store %arg6[%c0_21, %c0_22], %58 {strides = array<i32>} : memref<8x16xf32, #tpu.memory_space<vmem>>, vector<8x16xf32>,
      %c1_23 = arith.constant 1 : index
      %c0_24 = arith.constant 0 : index
      %c0_25 = arith.constant 0 : index
      %60 = vector.load %arg4[%c1_23, %c0_24, %c0_25] : memref<3x32x16xf32, #tpu.memory_space<vmem>>, vector<1x32x16xf32>
      %61 = vector.shape_cast %60 : vector<1x32x16xf32> to vector<32x16xf32>
      %cst_26 = arith.constant dense<0.000000e+00> : vector<8x16xf32>
      %62 = tpu.matmul %55, %61, %cst_26 {dimension_numbers = #tpu.dot_dimension_numbers<[1], [0], [0], [1], [0, 0, 1, 1], [], []>} : vector<8x32xf32>, vector<32x16xf32>, vector<8x16xf32> -> vector<8x16xf32>
      %c0_27 = arith.constant 0 : index
      %c0_28 = arith.constant 0 : index
      %63 = vector.load %arg7[%c0_27, %c0_28] : memref<8x16xf32, #tpu.memory_space<vmem>>, vector<8x16xf32>
      tpu.vector_store %arg7[%c0_27, %c0_28], %62 {strides = array<i32>} : memref<8x16xf32, #tpu.memory_space<vmem>>, vector<8x16xf32>,
      %c2_29 = arith.constant 2 : index
      %c0_30 = arith.constant 0 : index
      %c0_31 = arith.constant 0 : index
      %64 = vector.load %arg4[%c2_29, %c0_30, %c0_31] : memref<3x32x16xf32, #tpu.memory_space<vmem>>, vector<1x32x16xf32>
      %65 = vector.shape_cast %64 : vector<1x32x16xf32> to vector<32x16xf32>
      %cst_32 = arith.constant dense<0.000000e+00> : vector<8x16xf32>
      %66 = tpu.matmul %55, %65, %cst_32 {dimension_numbers = #tpu.dot_dimension_numbers<[1], [0], [0], [1], [0, 0, 1, 1], [], []>} : vector<8x32xf32>, vector<32x16xf32>, vector<8x16xf32> -> vector<8x16xf32>
      %c0_33 = arith.constant 0 : index
      %c0_34 = arith.constant 0 : index
      %67 = vector.load %arg8[%c0_33, %c0_34] : memref<8x16xf32, #tpu.memory_space<vmem>>, vector<8x16xf32>
      tpu.vector_store %arg8[%c0_33, %c0_34], %66 {strides = array<i32>} : memref<8x16xf32, #tpu.memory_space<vmem>>, vector<8x16xf32>,
    } else {
    }
    %c0 = arith.constant 0 : index
    %c0_1 = arith.constant 0 : index
    %3 = vector.load %arg6[%c0, %c0_1] : memref<8x16xf32, #tpu.memory_space<vmem>>, vector<8x16xf32>
    %c0_2 = arith.constant 0 : index
    %c0_3 = arith.constant 0 : index
    %4 = vector.load %arg7[%c0_2, %c0_3] : memref<8x16xf32, #tpu.memory_space<vmem>>, vector<8x16xf32>
    %c0_4 = arith.constant 0 : index
    %c0_5 = arith.constant 0 : index
    %5 = vector.load %arg8[%c0_4, %c0_5] : memref<8x16xf32, #tpu.memory_space<vmem>>, vector<8x16xf32>
    %c4_i32 = arith.constant 4 : i32
    %6 = arith.muli %arg2, %c4_i32 : i32
    %c1_i32 = arith.constant 1 : i32
    %7 = arith.addi %6, %c1_i32 : i32
    %8 = arith.sitofp %7 : i32 to f32
    %9 = vector.broadcast %8 : f32 to vector<8x16xf32>
    %10 = arith.mulf %9, %4 : vector<8x16xf32>
    %11 = arith.addf %3, %10 : vector<8x16xf32>
    %12 = arith.mulf %8, %8 : f32
    %13 = vector.broadcast %12 : f32 to vector<8x16xf32>
    %14 = arith.mulf %13, %5 : vector<8x16xf32>
    %15 = arith.addf %11, %14 : vector<8x16xf32>
    %c0_6 = arith.constant 0 : index
    %c0_7 = arith.constant 0 : index
    %c0_8 = arith.constant 0 : index
    %16 = vector.load %arg5[%c0_6, %c0_7, %c0_8] : memref<4x8x16xf32, #tpu.memory_space<vmem>>, vector<1x8x16xf32>
    %17 = vector.shape_cast %16 : vector<1x8x16xf32> to vector<8x16xf32>
    %18 = vector.shape_cast %15 : vector<8x16xf32> to vector<1x8x16xf32>
    tpu.vector_store %arg5[%c0_6, %c0_7, %c0_8], %18 {strides = array<i32>} : memref<4x8x16xf32, #tpu.memory_space<vmem>>, vector<1x8x16xf32>,
    %c2_i32 = arith.constant 2 : i32
    %19 = arith.addi %6, %c2_i32 : i32
    %20 = arith.sitofp %19 : i32 to f32
    %21 = vector.broadcast %20 : f32 to vector<8x16xf32>
    %22 = arith.mulf %21, %4 : vector<8x16xf32>
    %23 = arith.addf %3, %22 : vector<8x16xf32>
    %24 = arith.mulf %20, %20 : f32
    %25 = vector.broadcast %24 : f32 to vector<8x16xf32>
    %26 = arith.mulf %25, %5 : vector<8x16xf32>
    %27 = arith.addf %23, %26 : vector<8x16xf32>
    %c1 = arith.constant 1 : index
    %c0_9 = arith.constant 0 : index
    %c0_10 = arith.constant 0 : index
    %28 = vector.load %arg5[%c1, %c0_9, %c0_10] : memref<4x8x16xf32, #tpu.memory_space<vmem>>, vector<1x8x16xf32>
    %29 = vector.shape_cast %28 : vector<1x8x16xf32> to vector<8x16xf32>
    %30 = vector.shape_cast %27 : vector<8x16xf32> to vector<1x8x16xf32>
    tpu.vector_store %arg5[%c1, %c0_9, %c0_10], %30 {strides = array<i32>} : memref<4x8x16xf32, #tpu.memory_space<vmem>>, vector<1x8x16xf32>,
    %c3_i32 = arith.constant 3 : i32
    %31 = arith.addi %6, %c3_i32 : i32
    %32 = arith.sitofp %31 : i32 to f32
    %33 = vector.broadcast %32 : f32 to vector<8x16xf32>
    %34 = arith.mulf %33, %4 : vector<8x16xf32>
    %35 = arith.addf %3, %34 : vector<8x16xf32>
    %36 = arith.mulf %32, %32 : f32
    %37 = vector.broadcast %36 : f32 to vector<8x16xf32>
    %38 = arith.mulf %37, %5 : vector<8x16xf32>
    %39 = arith.addf %35, %38 : vector<8x16xf32>
    %c2 = arith.constant 2 : index
    %c0_11 = arith.constant 0 : index
    %c0_12 = arith.constant 0 : index
    %40 = vector.load %arg5[%c2, %c0_11, %c0_12] : memref<4x8x16xf32, #tpu.memory_space<vmem>>, vector<1x8x16xf32>
    %41 = vector.shape_cast %40 : vector<1x8x16xf32> to vector<8x16xf32>
    %42 = vector.shape_cast %39 : vector<8x16xf32> to vector<1x8x16xf32>
    tpu.vector_store %arg5[%c2, %c0_11, %c0_12], %42 {strides = array<i32>} : memref<4x8x16xf32, #tpu.memory_space<vmem>>, vector<1x8x16xf32>,
    %c4_i32_13 = arith.constant 4 : i32
    %43 = arith.addi %6, %c4_i32_13 : i32
    %44 = arith.sitofp %43 : i32 to f32
    %45 = vector.broadcast %44 : f32 to vector<8x16xf32>
    %46 = arith.mulf %45, %4 : vector<8x16xf32>
    %47 = arith.addf %3, %46 : vector<8x16xf32>
    %48 = arith.mulf %44, %44 : f32
    %49 = vector.broadcast %48 : f32 to vector<8x16xf32>
    %50 = arith.mulf %49, %5 : vector<8x16xf32>
    %51 = arith.addf %47, %50 : vector<8x16xf32>
    %c3 = arith.constant 3 : index
    %c0_14 = arith.constant 0 : index
    %c0_15 = arith.constant 0 : index
    %52 = vector.load %arg5[%c3, %c0_14, %c0_15] : memref<4x8x16xf32, #tpu.memory_space<vmem>>, vector<1x8x16xf32>
    %53 = vector.shape_cast %52 : vector<1x8x16xf32> to vector<8x16xf32>
    %54 = vector.shape_cast %51 : vector<8x16xf32> to vector<1x8x16xf32>
    tpu.vector_store %arg5[%c3, %c0_14, %c0_15], %54 {strides = array<i32>} : memref<4x8x16xf32, #tpu.memory_space<vmem>>, vector<1x8x16xf32>,
    return
  }
  func.func @transform_0(%arg0: i32, %arg1: i32, %arg2: i32) -> (i32, i32) {
    %c0_i32 = arith.constant 0 : i32
    %c0_i32_0 = arith.constant 0 : i32
    return %arg0, %c0_i32 : i32, i32
  }
  func.func @transform_1(%arg0: i32, %arg1: i32, %arg2: i32) -> (i32, i32, i32) {
    %c0_i32 = arith.constant 0 : i32
    %c0_i32_0 = arith.constant 0 : i32
    %c0_i32_1 = arith.constant 0 : i32
    return %c0_i32, %c0_i32_0, %arg1 : i32, i32, i32
  }
  func.func @transform_2(%arg0: i32, %arg1: i32, %arg2: i32) -> (i32, i32, i32) {
    %c0_i32 = arith.constant 0 : i32
    return %arg2, %arg0, %arg1 : i32, i32, i32
  }
}

</mosaic_0001>

<bundles_post_ra>
// kernel: tpu_custom_call.1
= control target key start
LH: loop header
LB: loop body
LE: loop exit
PB: predicated region body
PF: predicated region fallthrough
CT: control target
= control target key end

     0   :  { %7 = vsyncpa [#allocation6], 0  ;;  %s751_s0 = inlined_call_operand.vmem [shape: f32[16,32], index: 0, kind: input, shape index: {}]   ;;  %s752_s1 = inlined_call_operand.vmem [shape: f32[3,32,16], index: 1, kind: input, shape index: {}]   ;;  %s753_s2 = inlined_call_operand.hbm [shape: f32[4,16,16], index: 2, kind: output, shape index: {}]  }
   0x1   :  { %9 = vsyncpa [#allocation6 + $0x1], 0  ;;  %s607_s9 = smov 0   ;;  %s609_s10 = smov 0  }
   0x2   :  { %s611_s11 = smov 0   ;;  %s613_s12 = smov 0  }
   0x3   :  { %s615_s13 = smov 0   ;;  %s617_s14 = smov 0  }
   0x4 LB: > { %s425_s15 = sadd.s32 4294967295, %s587_s14   ;;  %s426_s16 = sadd.s32 4294967294, %s587_s14   ;;  %s587_s14 = sphi %s617_s14, %s15_s14   ;;  %s583_s13 = sphi %s615_s13, %s760_s13   ;;  %s579_s12 = sphi %s613_s12, %s759_s12   ;;  %s575_s11 = sphi %s611_s11, %s758_s11   ;;  %s571_s10 = sphi %s609_s10, %s757_s10   ;;  %s567_s9 = sphi %s607_s9, %s756_s9  }
   0x5   : > { %s34_s17 = sadd.s32 1, %s583_s13  ;;  %s97_s18 = sadd.s32 1, %s575_s11 }
   0x6   : > { %p36_p0 = scmp.ge.s32.totalorder %s34_s17, 2  ;;  %p107_p1 = scmp.ne.s32.totalorder %s575_s11, %s571_s10 }
   0x7   : > { %p108_p2 = scmp.eq.s32.totalorder %s425_s15, 1  ;;  %p113_p3 = scmp.ne.s32.totalorder %s571_s10, %s567_s9 }
   0x8   : > { %s762_s17 = smov (%p36_p0, %s34_s17), 0  ;;  %p114_p5 = scmp.eq.s32.totalorder %s426_s16, 1 }
   0x9   : > { %p647_p4 = por %p108_p2, %p107_p1  ;;  %s91_s20 = ssub.s32 %s583_s13, %s762_s17 }
   0xa   : > { %p430_p6 = scmp.ge.s32.totalorder %s587_s14, 1  ;;  %p95_p7 = scmp.eq.s32.totalorder %s91_s20, 0 }
   0xb   : > { %p654_p8 = por %p114_p5, %p113_p3  ;;  %p146_p9 = scmp.lt.s32.totalorder %s587_s14, 3 }
   0xc   : > { %s660_s22 = scalar_select %p95_p7, %s575_s11, %s97_s18  }
   0xd   : > { %p147_p10 = pnand %p430_p6, %p146_p9 }
   0xe   : > { %p171_p11 = scmp.lt.s32.totalorder (!%p147_p10), %s579_s12, 1  ;;  %s168_s6 = sand.u32 (!%p147_p10), 1, %s571_s10  }
   0xf   : > { %150 = sbr.rel (%p147_p10) target bundleno = 179 (0xb3), region = 28  ;;  %s431_s7 = sshll.u32 (!%p147_p10), %s168_s6, 5 }
  0x10   : > { %s448_s8 = sshll.u32 (!%p147_p10), %s579_s12, 3  ;;  %s170_s20 = scalar_lea.vmem (!%p147_p10), [#allocation5], %s431_s7 }
  0x11   : > { %s330_s18 = scalar_lea.hbm (!%p147_p10), %s753_s2, %s448_s8  ;;  %s331_s23 = sshll.u32 (!%p147_p10), %s170_s20, 4  ;;  %s332_s23 = int_to_ptr.vmem [resolvable:$true] %s331_s23 }
  0x12   : > { %s316_s24 = scalar_lea.sflag (!%p147_p10), [#allocation6], %s168_s6  ;;  %s529_s29 = scalar_lea.hbm (!%p147_p10), %s753_s2, 64 }
  0x14   : > { %v442_v0 = vld [vmem:[%s752_s1 + $0x58] sm:$0xff]  ;;  %v441_v1 = vld [vmem:[%s752_s1 + $0x50] sm:$0xff]  ;;  %v440_v5 = vld [vmem:[%s752_s1 + $0x48] sm:$0xff]  ;;  %s172_s15 = scalar_select %p171_p11, %s579_s12, 1  ;;  %vm189_vm0 = vcmask 261120   ;;  %vm213_vm1 = vcmask 130048  }
  0x15   : > { %v188_v2 = vld [vmem:[%s752_s1 + $0x18] sm:$0xff]  ;;  %258 = vmatpush.msra.mxu2 %v442_v0  ;;  %v187_v4 = vld [vmem:[%s752_s1 + $0x10] sm:$0xff]  ;;  %v186_v7 = vld [vmem:[%s752_s1 + $0x8] sm:$0xff]  ;;  %s333_s12 = sshll.u32 %s330_s18, 4  ;;  %s334_s12 = int_to_ptr.hbm [resolvable:$true] %s333_s12 }
  0x16   : > { %205 = vmatpush.msra.mxu0 %v188_v2  ;;  %v437_v3 = vld [vmem:[%s752_s1 + $0x38] sm:$0xff]  ;;  %v436_v6 = vld [vmem:[%s752_s1 + $0x30] sm:$0xff]  ;;  %v435_v8 = vld [vmem:[%s752_s1 + $0x28] sm:$0xff]  ;;  %s432_s26 = sshll.u32 %s172_s15, 3  ;;  %s523_s25 = sshra.s32 %s334_s12, 4  ;;  %s524_s25 = int_to_ptr.hbm [resolvable:$true] %s523_s25 }
  0x17   : > { %232 = vmatpush.msra.mxu1 %v437_v3  ;;  %259 = vmatpush.msra.mxu2 %v441_v1  ;;  %v439_v9 = vld [vmem:[%s752_s1 + $0x40] sm:$0xff]  ;;  %s174_s3 = scalar_lea.vmem %s751_s0, %s432_s26  ;;  %s525_s26 = scalar_lea.hbm %s524_s25, 32 }
  0x18   : > { %206 = vmatpush.msra.mxu0 %v187_v4  ;;  %v185_v10 = vld [vmem:[%s752_s1] sm:$0xff]  ;;  %p526_p12 = scmp.ne.s32.totalorder %s524_s25, %s525_s26  ;;  %p530_p1 = scmp.lt.s32.totalorder %s524_s25, %s753_s2 }
  0x19   : > { %233 = vmatpush.msra.mxu1 %v436_v6  ;;  %260 = vmatpush.msra.mxu2 %v440_v5  ;;  %v434_v11 = vld [vmem:[%s752_s1 + $0x20] sm:$0xff]  ;;  %p531_p2 = scmp.lt.s32.totalorder %s529_s29, %s525_s26 }
  0x1a   : > { %207 = vmatpush.msra.mxu0 %v186_v7  ;;  %v184_v12 = vld [vmem:[%s174_s3] sm:$0xff]  ;;  %p527_p13 = pnand %p526_p12, %p647_p4 }
  0x1b   : > { %234 = vmatpush.msra.mxu1 %v435_v8  ;;  %261 = vmatpush.msra.mxu2 %v439_v9  ;;  %p532_p3 = por %p531_p2, %p530_p1 }
  0x1c   : > { %208 = vmatpush.msra.mxu0 %v185_v10  ;;  %443 = vmatmul.msk.f32.vlgmr.msra.gmra.mxu2 %vm189_vm0, %v184_v12  ;;  %p528_p0 = pneg %p527_p13 }
  0x1d   : > { %235 = vmatpush.msra.mxu1 %v434_v11  ;;  %433 = vmatmul.msk.f32.vlgmr.msra.gmra.mxu0 %vm189_vm0, %v184_v12 }
  0x1e   : > { %438 = vmatmul.msk.f32.vlgmr.msra.gmra.mxu1 %vm189_vm0, %v184_v12  ;;  %p533_p5 = pnand %p532_p3, %p528_p0 }
  0x9a   : > { %v210_v13 = vpop.f32.mrf.mxu0 }
  0x9b   : > { %v237_v14 = vpop.f32.mrf.mxu1  ;;  %214 = vst.msk [vmem:[#allocation2] sm:$0xff] %vm213_vm1, %v210_v13 }
  0x9c   : > { %240 = vst.msk [vmem:[#allocation3] sm:$0xff] %vm213_vm1, %v237_v14 }
  0x9f   : > { %v263_v15 = vpop.f32.mrf.mxu2 }
  0xa0   : > { %266 = vst.msk [vmem:[#allocation4] sm:$0xff] %vm213_vm1, %v263_v15 }
  0xa2   : > { %v267_v16 = vld [vmem:[#allocation2] sm:$0xff] }
  0xa3   : > { %v268_v17 = vld [vmem:[#allocation3] sm:$0xff] }
  0xa4   : > { %v275_v18 = vadd.f32 %v268_v17, %v267_v16  ;;  %v285_v19 = vmul.f32 2.0, %v268_v17  ;;  %v296_v20 = vmul.f32 3.0, %v268_v17  ;;  %v307_v21 = vmul.f32 4.0, %v268_v17 }
  0xa6   : > { %v286_v22 = vadd.f32 %v285_v19, %v267_v16  ;;  %v297_v23 = vadd.f32 %v296_v20, %v267_v16  ;;  %v308_v24 = vadd.f32 %v307_v21, %v267_v16 }
  0xa7   : > { %v269_v25 = vld [vmem:[#allocation4] sm:$0xff] }
  0xa8   : > { %v279_v26 = vadd.f32 %v275_v18, %v269_v25  ;;  %v289_v27 = vmul.f32 4.0, %v269_v25  ;;  %v300_v28 = vmul.f32 9.0, %v269_v25  ;;  %v311_v29 = vmul.f32 16.0, %v269_v25 }
  0xaa   : > { %281 = vst.msk [vmem:[%s170_s20] sm:$0xff] %vm213_vm1, %v279_v26  ;;  %v290_v30 = vadd.f32 %v289_v27, %v286_v22  ;;  %v301_v31 = vadd.f32 %v300_v28, %v297_v23  ;;  %v312_v32 = vadd.f32 %v311_v29, %v308_v24 }
  0xac   : > { %444 = vst.msk [vmem:[%s170_s20 + $0x8] sm:$0xff] %vm213_vm1, %v290_v30 }
  0xad   : > { %445 = vst.msk [vmem:[%s170_s20 + $0x10] sm:$0xff] %vm213_vm1, %v301_v31 }
  0xae   : > { %446 = vst.msk [vmem:[%s170_s20 + $0x18] sm:$0xff] %vm213_vm1, %v312_v32 }
  0xaf   : > { %536 = shalt.err (!%p533_p5)
}
  0xb0   : > { %s589_s4 = smov 128   ;;  %s590_s5 = smov 256  }
  0xb1   : > { %s591_s6 = smov 8  }
  0xb2   : > { %451 = dma.vmem_to_hbm [thread:$0]  (%p647_p4), %s332_s23, 512, %s334_s12, %s316_s24, %s589_s4, %s590_s5, %s591_s6  }
  0xb3 PF: > { %p457_p6 = scmp.ge.s32.totalorder %s587_s14, 2  ;;  %s348_s7 = sand.u32 1, %s567_s9  }
  0xb4   : > { %s349_s8 = scalar_lea.sflag [#allocation6], %s348_s7 }
  0xb5   : > { %p454_p7 = pnand %p457_p6, %p654_p8 }
  0xb7   : > { %p455_p9 = pneg %p454_p7 }
  0xb9   : > { %562 = dma.done.wait (%p455_p9), %s349_s8, 512  }
  0xba   : > { %564 = vsyncadd (%p455_p9), %s349_s8, 4294966784  ;;  %s15_s14 = sadd.s32 1, %s587_s14   ;;  %s756_s9 = smov %s571_s10 }
  0xbb   : > { %p12_p10 = scmp.ge.s32.totalorder %s15_s14, 4   ;;  %s757_s10 = smov %s575_s11 }
  0xbc   : > { %s758_s11 = smov %s660_s22  ;;  %s759_s12 = smov %s583_s13 }
  0xbd   : > { %s760_s13 = smov %s762_s17  ;;  %14 = sbr.rel (!%p12_p10) target bundleno = 4 (0x4), region = 75 }
  0xc2   :  { %355 = vsyncpa [#allocation6], 1 }
  0xc3   :  { %357 = vsyncpa [#allocation6 + $0x1], 1 }

</bundles_post_ra>
